<compile_context>
chip_gen: v7x
topology: tpu7x:2x2x1
jax: 0.10.0
libtpu: 0.0.40
codegen_flags: <defaults>
</compile_context>

<pallas_src>
import numpy as np
import jax
import jax.numpy as jnp
from jax.experimental import pallas as pl
from jax.experimental.pallas import tpu as pltpu


def gat_kernel(x_ref, wt_ref, wbig_ref, bias_ref, o_ref):
    # x_ref:    (GB*3L, T) bf16  rows per group: [head(0:L) | rel(L:2L) | tail(2L:3L)]
    # wt_ref:   (T, T)     bf16  fc_trans_transform weight
    # wbig_ref: (T, 3T)    bf16  [Wht[:T] | Wrel | Wht[T:]]
    # bias_ref: (3, T)     f32   rows: [b_trans, b_head_tail, b_relation]
    # o_ref:    (GB, 2T)   f32   graph embeddings [ge_head | ge_tail]
    rows, T = x_ref.shape
    GB = o_ref.shape[0]
    L = rows // (GB * 3)

    bt = bias_ref[0:1, :]
    bht = bias_ref[1:2, :]
    brel = bias_ref[2:3, :]

    x = x_ref[...]                                               # bf16

    # Stage 1: shared Linear(T, T) + Tanh over all head/rel/tail rows (1 MXU push,
    # M = GB*3L).  Accumulate in f32; bias/tanh in f32.
    trans = jnp.tanh(
        jnp.dot(x, wt_ref[...], preferred_element_type=jnp.float32) + bt)

    # Stage 2: fused head-tail / relation transform (1 MXU push, N = 3T).
    y = jnp.dot(trans.astype(x.dtype), wbig_ref[...],
                preferred_element_type=jnp.float32)              # (GB*3L, 3T) f32

    trans3 = trans.reshape(GB, 3 * L, T)                         # f32, tile-aligned split
    y3 = y.reshape(GB, 3 * L, 3 * T)

    head = trans3[:, 0:L, :]                                     # (GB, L, T)
    tail = trans3[:, 2 * L:3 * L, :]

    # ht_t = tanh(head @ Wht[:T] + tail @ Wht[T:] + bht); rel_t = rel @ Wrel + brel
    ht_t = jnp.tanh(y3[:, 0:L, 0:T] + y3[:, 2 * L:3 * L, 2 * T:3 * T] + bht)
    rel_t = y3[:, L:2 * L, T:2 * T] + brel

    # Attention over the triple_len (L) axis, per group (f32).
    ew = jnp.sum(rel_t * ht_t, axis=-1, keepdims=True)           # (GB, L, 1)
    m = jnp.max(ew, axis=1, keepdims=True)                       # (GB, 1, 1)
    p = jnp.exp(ew - m)
    denom = jnp.sum(p, axis=1, keepdims=True)                    # (GB, 1, 1)
    alpha = p * pl.reciprocal(denom, approx=True)                # (GB, L, 1)

    # graph_embed = sum_l alpha_l * [head_l, tail_l]; write halves directly.
    o_ref[:, 0:T] = jnp.sum(alpha * head, axis=1).astype(o_ref.dtype)
    o_ref[:, T:2 * T] = jnp.sum(alpha * tail, axis=1).astype(o_ref.dtype)


def static_graph_attention(emb_table, wt, bt, wht, bht, wrel, brel,
                           sents, triples, sent_triples, *, group_block=None):
    """Mirrors StaticGraphAttentionLayer.forward.

    sents:        (B, S)        int32 (only shape used)
    triples:      (B, N, L, 3)  int32 indices into emb_table
    sent_triples: (B, S, 1)     int32 indices into the triple_num axis
    returns:      (B, S, 2*T)   float32
    """
    B, N, L, _ = triples.shape
    T = wt.shape[0]
    G = B * N

    # Group batch per grid step: big enough to amortize the ~0.35us/step overhead,
    # >= 2 grid steps so both v7x TensorCores get work, capped so double-buffered
    # blocks stay well inside v7x's smaller (64 MiB) VMEM.
    if group_block is None:
        group_block = max(1, min(64, pl.cdiv(G, 2)))
    GB = group_block
    n_blocks = pl.cdiv(G, GB)
    G_pad = n_blocks * GB

    mm_dtype = jnp.bfloat16   # MXU operands in bf16; bias/tanh/softmax stay f32.

    # Single gather in (B, N, 3, L) index order -> one contiguous fused operand
    # (no per-part slice/copy passes over the gathered tensor in HBM).
    idx = jnp.transpose(triples, (0, 1, 3, 2)).astype(jnp.int32)     # (B, N, 3, L)
    x = jnp.take(emb_table.astype(mm_dtype), idx, axis=0)            # (B, N, 3, L, T)
    x = x.reshape(G, 3 * L, T)
    if G_pad != G:
        x = jnp.pad(x, ((0, G_pad - G), (0, 0), (0, 0)))             # zero-pad groups
    x = x.reshape(G_pad * 3 * L, T)

    # Fused stage-2 weight: columns = [ W_ht(head half) | W_rel | W_ht(tail half) ].
    w_big = jnp.concatenate([wht[:T, :], wrel, wht[T:, :]], axis=1).astype(mm_dtype)
    wt_c = wt.astype(mm_dtype)
    biases = jnp.stack([bt, bht, brel], axis=0).astype(jnp.float32)  # (3, T)

    # VMEM budget: double-buffered I/O blocks + resident weights, 4x headroom,
    # capped at 32 MiB (safe on every generation incl. v7x 64 MiB physical).
    blk_bytes = (2 * GB * 3 * L * T * 2          # input block (bf16), 2 buffers
                 + 2 * GB * 2 * T * 4            # output block (f32), 2 buffers
                 + (T * T + T * 3 * T) * 2       # weights (bf16)
                 + 3 * T * 4)                    # biases (f32)
    vmem_limit = int(min(32 * 1024 * 1024, max(4 * 1024 * 1024, 4 * blk_bytes)))

    out = pl.pallas_call(
        gat_kernel,
        out_shape=jax.ShapeDtypeStruct((G_pad, 2 * T), jnp.float32),
        grid_spec=pltpu.PrefetchScalarGridSpec(
            num_scalar_prefetch=0,
            grid=(n_blocks,),
            in_specs=[
                pl.BlockSpec((GB * 3 * L, T), lambda g: (g, 0)),   # fused embeddings
                pl.BlockSpec((T, T), lambda g: (0, 0)),            # W_trans
                pl.BlockSpec((T, 3 * T), lambda g: (0, 0)),        # fused stage-2 W
                pl.BlockSpec((3, T), lambda g: (0, 0)),            # stacked biases
            ],
            out_specs=pl.BlockSpec((GB, 2 * T), lambda g: (g, 0)),
        ),
        compiler_params=pltpu.CompilerParams(
            dimension_semantics=("parallel",),
            vmem_limit_bytes=vmem_limit),
    )(x, wt_c, w_big, biases)

    graph_embed = out[:G].reshape(B, N, 2 * T)

    # gather_nd(graph_embed, [batch_idx, sent_triples]) (glue).
    sel = sent_triples[..., 0].astype(jnp.int32)                     # (B, S)
    return jnp.take_along_axis(graph_embed, sel[..., None], axis=1)  # (B, S, 2T)


def reference(emb_table, wt, bt, wht, bht, wrel, brel, sents, triples, sent_triples):
    e = jnp.take(emb_table, triples, axis=0)                    # (B, N, L, 3, T)
    trans = jnp.tanh(e @ wt + bt)                               # fc_trans_transform
    head, rel, tail = trans[..., 0, :], trans[..., 1, :], trans[..., 2, :]
    head_tail = jnp.concatenate([head, tail], axis=-1)
    ht_t = jnp.tanh(head_tail @ wht + bht)
    rel_t = rel @ wrel + brel
    ew = jnp.sum(rel_t * ht_t, axis=-1)
    alpha = jax.nn.softmax(ew, axis=-1)
    ge = jnp.sum(alpha[..., None] * head_tail, axis=2)          # (B, N, 2T)
    sel = sent_triples[..., 0].astype(jnp.int32)
    return jnp.take_along_axis(ge, sel[..., None], axis=1)


if __name__ == "__main__":
    B, S, N, L, T = 2, 8, 8, 8, 32      # bsz, sent_seq_len, triple_num, triple_len, num_trans_units
    VOCAB = 64                          # num entities + num relations

    key = jax.random.PRNGKey(0)
    k = jax.random.split(key, 10)

    # Deterministic synthetic parameters.
    # TODO(synk): entity_trans is loaded from entity_trans_path/relation_trans_path
    # text files in the original module; replaced by a deterministic random table.
    emb_table = jax.random.normal(k[0], (VOCAB, T), jnp.float32) * 0.5
    wt = jax.random.normal(k[1], (T, T), jnp.float32) * 0.1
    bt = jax.random.normal(k[2], (T,), jnp.float32) * 0.1
    wht = jax.random.normal(k[3], (2 * T, T), jnp.float32) * 0.1
    bht = jax.random.normal(k[4], (T,), jnp.float32) * 0.1
    wrel = jax.random.normal(k[5], (T, T), jnp.float32) * 0.1
    brel = jax.random.normal(k[6], (T,), jnp.float32) * 0.1

    # Inputs.
    sents = jax.random.randint(k[7], (B, S), 0, 100, jnp.int32)
    triples = jax.random.randint(k[8], (B, N, L, 3), 0, VOCAB, jnp.int32)
    sent_triples = jax.random.randint(k[9], (B, S, 1), 0, N, jnp.int32)

    fwd = jax.jit(static_graph_attention)
    out = jax.block_until_ready(
        fwd(emb_table, wt, bt, wht, bht, wrel, brel, sents, triples, sent_triples))

    ref = jax.block_until_ready(
        reference(emb_table, wt, bt, wht, bht, wrel, brel,
                  sents, triples, sent_triples))

    assert out.shape == (B, S, 2 * T), out.shape
    # bf16 MXU operands with f32 accumulation: slightly widened tolerance vs pure f32.
    np.testing.assert_allclose(np.asarray(out), np.asarray(ref), rtol=1e-2, atol=1e-2)
    print("KERNEL_OK")
</pallas_src>

<mosaic_0001>
module attributes {stable_mosaic.version = 11 : i64} {
  func.func @gat_kernel(%arg0: i32, %arg1: memref<192x32xbf16, #tpu.memory_space<vmem>>, %arg2: memref<32x32xbf16, #tpu.memory_space<vmem>>, %arg3: memref<32x96xbf16, #tpu.memory_space<vmem>>, %arg4: memref<3x32xf32, #tpu.memory_space<vmem>>, %arg5: memref<8x64xf32, #tpu.memory_space<vmem>>) attributes {dimension_semantics = [#tpu.dimension_semantics<parallel>], iteration_bounds = array<i64: 2>, scalar_prefetch = 0 : i64, scratch_operands = 0 : i64, tpu.core_type = #tpu.core_type<tc>, window_params = [{transform_indices = @transform_0, window_bounds = array<i64: 192, 32>}, {pipeline_mode = #tpu.pipeline_mode<synchronous>, transform_indices = @transform_1, window_bounds = array<i64: 32, 32>}, {pipeline_mode = #tpu.pipeline_mode<synchronous>, transform_indices = @transform_2, window_bounds = array<i64: 32, 96>}, {pipeline_mode = #tpu.pipeline_mode<synchronous>, transform_indices = @transform_3, window_bounds = array<i64: 3, 32>}, {transform_indices = @transform_4, window_bounds = array<i64: 8, 64>}]} {
    %c0 = arith.constant 0 : index
    %c0_0 = arith.constant 0 : index
    %0 = vector.load %arg4[%c0, %c0_0] : memref<3x32xf32, #tpu.memory_space<vmem>>, vector<1x32xf32>
    %c1 = arith.constant 1 : index
    %c0_1 = arith.constant 0 : index
    %1 = vector.load %arg4[%c1, %c0_1] : memref<3x32xf32, #tpu.memory_space<vmem>>, vector<1x32xf32>
    %c2 = arith.constant 2 : index
    %c0_2 = arith.constant 0 : index
    %2 = vector.load %arg4[%c2, %c0_2] : memref<3x32xf32, #tpu.memory_space<vmem>>, vector<1x32xf32>
    %c0_3 = arith.constant 0 : index
    %c0_4 = arith.constant 0 : index
    %3 = vector.load %arg1[%c0_3, %c0_4] : memref<192x32xbf16, #tpu.memory_space<vmem>>, vector<192x32xbf16>
    %c0_5 = arith.constant 0 : index
    %c0_6 = arith.constant 0 : index
    %4 = vector.load %arg2[%c0_5, %c0_6] : memref<32x32xbf16, #tpu.memory_space<vmem>>, vector<32x32xbf16>
    %cst = arith.constant dense<0.000000e+00> : vector<192x32xf32>
    %5 = tpu.matmul %3, %4, %cst {dimension_numbers = #tpu.dot_dimension_numbers<[1], [0], [0], [1], [0, 0, 1, 1], [], []>} : vector<192x32xbf16>, vector<32x32xbf16>, vector<192x32xf32> -> vector<192x32xf32>
    %6 = vector.broadcast %0 : vector<1x32xf32> to vector<192x32xf32>
    %7 = arith.addf %5, %6 : vector<192x32xf32>
    %8 = math.tanh %7 : vector<192x32xf32>
    %9 = arith.truncf %8 : vector<192x32xf32> to vector<192x32xbf16>
    %c0_7 = arith.constant 0 : index
    %c0_8 = arith.constant 0 : index
    %10 = vector.load %arg3[%c0_7, %c0_8] : memref<32x96xbf16, #tpu.memory_space<vmem>>, vector<32x96xbf16>
    %cst_9 = arith.constant dense<0.000000e+00> : vector<192x96xf32>
    %11 = tpu.matmul %9, %10, %cst_9 {dimension_numbers = #tpu.dot_dimension_numbers<[1], [0], [0], [1], [0, 0, 1, 1], [], []>} : vector<192x32xbf16>, vector<32x96xbf16>, vector<192x96xf32> -> vector<192x96xf32>
    %12 = vector.shape_cast %8 : vector<192x32xf32> to vector<8x24x32xf32>
    %13 = vector.shape_cast %11 : vector<192x96xf32> to vector<8x24x96xf32>
    %14 = vector.extract_strided_slice %12 {offsets = [0, 0, 0], sizes = [8, 8, 32], strides = [1, 1, 1]} : vector<8x24x32xf32> to vector<8x8x32xf32>
    %15 = vector.extract_strided_slice %12 {offsets = [0, 16, 0], sizes = [8, 8, 32], strides = [1, 1, 1]} : vector<8x24x32xf32> to vector<8x8x32xf32>
    %16 = vector.extract_strided_slice %13 {offsets = [0, 0, 0], sizes = [8, 8, 32], strides = [1, 1, 1]} : vector<8x24x96xf32> to vector<8x8x32xf32>
    %17 = vector.extract_strided_slice %13 {offsets = [0, 16, 64], sizes = [8, 8, 32], strides = [1, 1, 1]} : vector<8x24x96xf32> to vector<8x8x32xf32>
    %18 = arith.addf %16, %17 : vector<8x8x32xf32>
    %19 = vector.shape_cast %1 : vector<1x32xf32> to vector<1x1x32xf32>
    %20 = vector.broadcast %19 : vector<1x1x32xf32> to vector<8x8x32xf32>
    %21 = arith.addf %18, %20 : vector<8x8x32xf32>
    %22 = math.tanh %21 : vector<8x8x32xf32>
    %23 = vector.extract_strided_slice %13 {offsets = [0, 8, 32], sizes = [8, 8, 32], strides = [1, 1, 1]} : vector<8x24x96xf32> to vector<8x8x32xf32>
    %24 = vector.shape_cast %2 : vector<1x32xf32> to vector<1x1x32xf32>
    %25 = vector.broadcast %24 : vector<1x1x32xf32> to vector<8x8x32xf32>
    %26 = arith.addf %23, %25 : vector<8x8x32xf32>
    %27 = arith.mulf %26, %22 : vector<8x8x32xf32>
    %cst_10 = arith.constant dense<0.000000e+00> : vector<8x8xf32>
    %28 = vector.multi_reduction <add>, %27, %cst_10 [2] : vector<8x8x32xf32> to vector<8x8xf32>
    %29 = vector.shape_cast %28 : vector<8x8xf32> to vector<8x8x1xf32>
    %cst_11 = arith.constant dense<0xFF800000> : vector<8x1xf32>
    %30 = vector.multi_reduction <maximumf>, %29, %cst_11 [1] : vector<8x8x1xf32> to vector<8x1xf32>
    %31 = vector.shape_cast %30 : vector<8x1xf32> to vector<8x1x1xf32>
    %32 = vector.broadcast %31 : vector<8x1x1xf32> to vector<8x8x1xf32>
    %33 = arith.subf %29, %32 : vector<8x8x1xf32>
    %34 = math.exp %33 : vector<8x8x1xf32>
    %cst_12 = arith.constant dense<0.000000e+00> : vector<8x1xf32>
    %35 = vector.multi_reduction <add>, %34, %cst_12 [1] : vector<8x8x1xf32> to vector<8x1xf32>
    %36 = vector.shape_cast %35 : vector<8x1xf32> to vector<8x1x1xf32>
    %37 = tpu.reciprocal %36 {approx = true} : vector<8x1x1xf32> -> vector<8x1x1xf32>
    %38 = vector.broadcast %37 : vector<8x1x1xf32> to vector<8x8x1xf32>
    %39 = arith.mulf %34, %38 : vector<8x8x1xf32>
    %40 = vector.broadcast %39 : vector<8x8x1xf32> to vector<8x8x32xf32>
    %41 = arith.mulf %40, %14 : vector<8x8x32xf32>
    %cst_13 = arith.constant dense<0.000000e+00> : vector<8x32xf32>
    %42 = vector.multi_reduction <add>, %41, %cst_13 [1] : vector<8x8x32xf32> to vector<8x32xf32>
    %c0_14 = arith.constant 0 : index
    %c0_15 = arith.constant 0 : index
    %43 = vector.load %arg5[%c0_14, %c0_15] : memref<8x64xf32, #tpu.memory_space<vmem>>, vector<8x32xf32>
    tpu.vector_store %arg5[%c0_14, %c0_15], %42 {strides = array<i32>} : memref<8x64xf32, #tpu.memory_space<vmem>>, vector<8x32xf32>,
    %44 = vector.broadcast %39 : vector<8x8x1xf32> to vector<8x8x32xf32>
    %45 = arith.mulf %44, %15 : vector<8x8x32xf32>
    %cst_16 = arith.constant dense<0.000000e+00> : vector<8x32xf32>
    %46 = vector.multi_reduction <add>, %45, %cst_16 [1] : vector<8x8x32xf32> to vector<8x32xf32>
    %c0_17 = arith.constant 0 : index
    %c32 = arith.constant 32 : index
    %47 = vector.load %arg5[%c0_17, %c32] : memref<8x64xf32, #tpu.memory_space<vmem>>, vector<8x32xf32>
    tpu.vector_store %arg5[%c0_17, %c32], %46 {strides = array<i32>} : memref<8x64xf32, #tpu.memory_space<vmem>>, vector<8x32xf32>,
    return
  }
  func.func @transform_0(%arg0: i32) -> (i32, i32) {
    %c0_i32 = arith.constant 0 : i32
    %c0_i32_0 = arith.constant 0 : i32
    return %arg0, %c0_i32 : i32, i32
  }
  func.func @transform_1(%arg0: i32) -> (i32, i32) {
    %c0_i32 = arith.constant 0 : i32
    %c0_i32_0 = arith.constant 0 : i32
    %c0_i32_1 = arith.constant 0 : i32
    return %c0_i32, %c0_i32_0 : i32, i32
  }
  func.func @transform_2(%arg0: i32) -> (i32, i32) {
    %c0_i32 = arith.constant 0 : i32
    %c0_i32_0 = arith.constant 0 : i32
    %c0_i32_1 = arith.constant 0 : i32
    return %c0_i32, %c0_i32_0 : i32, i32
  }
  func.func @transform_3(%arg0: i32) -> (i32, i32) {
    %c0_i32 = arith.constant 0 : i32
    %c0_i32_0 = arith.constant 0 : i32
    %c0_i32_1 = arith.constant 0 : i32
    return %c0_i32, %c0_i32_0 : i32, i32
  }
  func.func @transform_4(%arg0: i32) -> (i32, i32) {
    %c0_i32 = arith.constant 0 : i32
    %c0_i32_0 = arith.constant 0 : i32
    return %arg0, %c0_i32 : i32, i32
  }
}

</mosaic_0001>

<bundles_post_ra>
// kernel: static_graph_attention.1
= control target key start
LH: loop header
LB: loop body
LE: loop exit
PB: predicated region body
PF: predicated region fallthrough
CT: control target
= control target key end

     0   :  { %s1517_s15 = smov 0   ;;  %s1790_s0 = inlined_call_operand.vmem [shape: bf16[384,32], index: 0, kind: input, shape index: {}]   ;;  %s1791_s1 = inlined_call_operand.vmem [shape: bf16[32,32], index: 1, kind: input, shape index: {}]   ;;  %s1792_s2 = inlined_call_operand.vmem [shape: bf16[32,96], index: 2, kind: input, shape index: {}]   ;;  %s1793_s3 = inlined_call_operand.vmem [shape: f32[3,32], index: 3, kind: input, shape index: {}]   ;;  %s1794_s4 = inlined_call_operand.vmem [shape: f32[16,64], index: 4, kind: output, shape index: {}]  }
   0x1 LB: > { %s1523_s16 = sadd.s32 4294967295, %s1487_s15   ;;  %p1226_p0 = scmp.ge.s32.totalorder %s1487_s15, 1  ;;  %s1487_s15 = sphi %s1517_s15, %s14_s15  }
   0x2   : > { %p163_p1 = scmp.lt.s32.totalorder %s1487_s15, 3 }
   0x4   : > { %p164_p2 = pnand %p1226_p0, %p163_p1 }
   0x5   : > { %v1369_v0 = vld [vmem:[%s1791_s1] sm:$0xff] (!%p164_p2)   ;;  %s188_s19 = smul.u32 (!%p164_p2), 24, %s1523_s16  ;;  %v1370_v1 = vld [vmem:[%s1791_s1 + $0x8] sm:$0xff] (!%p164_p2)   ;;  %vm306_vm0 = vcmask (!%p164_p2), 261120   ;;  %s1489_s6 = smov (!%p164_p2), 64   ;;  %vm1069_vm1 = vcmask (!%p164_p2), 1041409  }
   0x6   : > { %167 = sbr.rel (%p164_p2) target bundleno = 1192 (0x4a8), region = 36  ;;  %1302 = vmatprep.subr.bf16.mxu0 (!%p164_p2), %v1369_v0  ;;  %v1383_v14 = vld [vmem:[%s1792_s2] sm:$0xff] (!%p164_p2)   ;;  %v1384_v15 = vld [vmem:[%s1792_s2 + $0x8] sm:$0xff] (!%p164_p2)   ;;  %s1490_s9 = smov (!%p164_p2), 32   ;;  %vm1071_vm2 = vcmask (!%p164_p2), 1042434   ;;  %vm1073_vm3 = vcmask (!%p164_p2), 1043459  }
   0x7   : > { %p189_p3 = scmp.lt.s32.totalorder (!%p164_p2), %s188_s19, 47  ;;  %1303 = vmatpush3.bf16.msra.mxu0 (!%p164_p2), %v1369_v0  ;;  %1330 = vmatprep.subr.bf16.mxu1 (!%p164_p2), %v1383_v14  ;;  %v1558_v16 = vld [vmem:[%s1793_s3] ss:$0 sm:$0xff] (!%p164_p2)  ;;  %s1491_s12 = smov (!%p164_p2), 96   ;;  %vm1075_vm4 = vcmask (!%p164_p2), 1044484   ;;  %vm1077_vm5 = vcmask (!%p164_p2), 1045509  }
   0x8   : > { %1304 = vmatprep.subr.bf16.mxu0 (!%p164_p2), %v1370_v1  ;;  %1331 = vmatpush3.bf16.msra.mxu1 (!%p164_p2), %v1383_v14  ;;  %vm1079_vm6 = vcmask (!%p164_p2), 1046534   ;;  %p194_p4 = scmp.lt.s32.totalorder (!%p164_p2), %s1523_s16, 1  ;;  %vm1081_vm7 = vcmask (!%p164_p2), 1047559   ;;  %vm1167_vm8 = vcmask (!%p164_p2), 523520  }
   0x9   : > { %1332 = vmatprep.subr.bf16.mxu1 (!%p164_p2), %v1384_v15 }
   0xb   : > { %1305 = vmatpush3.bf16.msra.mxu0 (!%p164_p2), %v1370_v1 }
   0xc   : > { %1333 = vmatpush3.bf16.msra.mxu1 (!%p164_p2), %v1384_v15 }
   0xd   : > { %s1796_s19 = smov (!%p189_p3, %s188_s19), 47  ;;  %s1798_s16 = smov (!%p194_p4, %s1523_s16), 1 }
   0xe   : > { %s1227_s22 = sshll.u32 %s1796_s19, 2  ;;  %s1228_s13 = sshll.u32 %s1798_s16, 3 }
   0xf   : > { %s192_s25 = scalar_lea.vmem %s1790_s0, %s1227_s22  ;;  %s197_s18 = scalar_lea.vmem %s1794_s4, %s1228_s13 }
  0x10   : > { %v1371_v2 = vld [vmem:[%s192_s25] sm:$0xff]   ;;  %v1372_v3 = vld [vmem:[%s192_s25 + $0x8] sm:$0xff]   ;;  %v1373_v4 = vld [vmem:[%s192_s25 + $0x10] sm:$0xff]  }
  0x11   : > { %1306 = vmatprep.mubr.msk.bf16.mxu0 %vm306_vm0, %v1371_v2  ;;  %v1374_v5 = vld [vmem:[%s192_s25 + $0x18] sm:$0xff]   ;;  %v1375_v6 = vld [vmem:[%s192_s25 + $0x20] sm:$0xff]   ;;  %v1376_v7 = vld [vmem:[%s192_s25 + $0x28] sm:$0xff]  }
  0x12   : > { %1307 = vmatmul.mubr.msk.bf16.vlgmr.msra.gmra.mrb[0].mxu0 %vm306_vm0, %v1372_v3  ;;  %v1377_v8 = vld [vmem:[%s192_s25 + $0x30] sm:$0xff]   ;;  %v1378_v9 = vld [vmem:[%s192_s25 + $0x38] sm:$0xff]   ;;  %v1379_v10 = vld [vmem:[%s192_s25 + $0x40] sm:$0xff]  }
  0x13   : > { %1310 = vmatprep.mubr.msk.bf16.mxu0 %vm306_vm0, %v1373_v4  ;;  %v1380_v11 = vld [vmem:[%s192_s25 + $0x48] sm:$0xff]   ;;  %v1381_v12 = vld [vmem:[%s192_s25 + $0x50] sm:$0xff]   ;;  %v1382_v13 = vld [vmem:[%s192_s25 + $0x58] sm:$0xff]  }
  0x1a   : > { %1311 = vmatmul.mubr.msk.bf16.gmra.mrb[4].mxu0 %vm306_vm0, %v1374_v5 }
  0x1b   : > { %1314 = vmatprep.mubr.msk.bf16.mxu0 %vm306_vm0, %v1375_v6 }
  0x22   : > { %1315 = vmatmul.mubr.msk.bf16.gmra.mrb[8].mxu0 %vm306_vm0, %v1376_v7 }
  0x23   : > { %1318 = vmatprep.mubr.msk.bf16.mxu0 %vm306_vm0, %v1377_v8 }
  0x2a   : > { %1319 = vmatmul.mubr.msk.bf16.gmra.mrb[12].mxu0 %vm306_vm0, %v1378_v9 }
  0x2b   : > { %1322 = vmatprep.mubr.msk.bf16.mxu0 %vm306_vm0, %v1379_v10 }
  0x32   : > { %1323 = vmatmul.mubr.msk.bf16.gmra.mrb[16].mxu0 %vm306_vm0, %v1380_v11 }
  0x33   : > { %1326 = vmatprep.mubr.msk.bf16.mxu0 %vm306_vm0, %v1381_v12 }
  0x3a   : > { %1327 = vmatmul.mubr.msk.bf16.gmra.mrb[20].mxu0 %vm306_vm0, %v1382_v13 }
  0xe5   : > { %v1308_v17 = vpop.f32.mrb[0].mxu0 }
  0xe6   : > { %v377_v18 = vpop.f32.mrb[1].mxu0  ;;  %v386_v21 = vadd.f32 %v1308_v17, %v1558_v16 }
  0xe7   : > { %v378_v19 = vadd.f32 %v1558_v16, %v377_v18  ;;  %v1309_v20 = vpop.f32.mrb[2].mxu0 }
  0xe8   : > { %v389_v22 = vadd.f32 %v1309_v20, %v1558_v16  ;;  %v380_v23 = vpop.f32.mrb[3].mxu0 }
  0xe9   : > { %1385 = vtanh.f32 %v378_v19  ;;  %v381_v24 = vadd.f32 %v1558_v16, %v380_v23 }
  0xea   : > { %1387 = vtanh.f32 %v389_v22 }
  0xeb   : > { %1389 = vtanh.f32 %v381_v24 }
  0xec   : > { %1391 = vtanh.f32 %v386_v21 }
  0xed   : > { %v1312_v25 = vpop.f32.mrb[4].mxu0 }
  0xee   : > { %v393_v26 = vpop.f32.mrb[5].mxu0  ;;  %v402_v29 = vadd.f32 %v1312_v25, %v1558_v16 }
  0xef   : > { %v394_v27 = vadd.f32 %v1558_v16, %v393_v26  ;;  %v1313_v28 = vpop.f32.mrb[6].mxu0 }
  0xf0   : > { %v405_v30 = vadd.f32 %v1313_v28, %v1558_v16  ;;  %v396_v31 = vpop.f32.mrb[7].mxu0 }
  0xf1   : > { %1393 = vtanh.f32 %v394_v27  ;;  %v397_v32 = vadd.f32 %v1558_v16, %v396_v31 }
  0xf2   : > { %1395 = vtanh.f32 %v405_v30 }
  0xf3   : > { %v1568_v33 = vpop.eup %1385  ;;  %1397 = vtanh.f32 %v397_v32 }
  0xf4   : > { %v1570_v34 = vpop.eup %1387  ;;  %1399 = vtanh.f32 %v402_v29 }
  0xf5   : > { %v1390_v35 = vpop.eup %1389  ;;  %v1316_v36 = vpop.f32.mrb[8].mxu0 }
  0xf6   : > { %v1572_v37 = vpop.eup %1391  ;;  %v409_v38 = vpop.f32.mrb[9].mxu0  ;;  %v496_v39 = vpack.c.bf16 %v1390_v35, %v1568_v33  ;;  %v418_v43 = vadd.f32 %v1316_v36, %v1558_v16 }
  0xf7   : > { %v410_v40 = vadd.f32 %v1558_v16, %v409_v38  ;;  %v1317_v41 = vpop.f32.mrb[10].mxu0  ;;  %v497_v42 = vpack.c.bf16 %v1570_v34, %v1572_v37 }
  0xf8   : > { %v421_v44 = vadd.f32 %v1317_v41, %v1558_v16  ;;  %v412_v45 = vpop.f32.mrb[11].mxu0  ;;  %1334 = vmatprep.mubr.msk.bf16.mxu1 %vm306_vm0, %v496_v39 }
  0xf9   : > { %1401 = vtanh.f32 %v410_v40  ;;  %v413_v46 = vadd.f32 %v1558_v16, %v412_v45  ;;  %1335 = vmatmul.mubr.msk.bf16.vlgmr.msra.gmra.mrb[0].mxu1 %vm306_vm0, %v497_v42 }
  0xfa   : > { %1403 = vtanh.f32 %v421_v44 }
  0xfb   : > { %v1394_v47 = vpop.eup %1393  ;;  %1405 = vtanh.f32 %v413_v46 }
  0xfc   : > { %v1396_v48 = vpop.eup %1395  ;;  %1407 = vtanh.f32 %v418_v43 }
  0xfd   : > { %v1583_v49 = vpop.eup %1397  ;;  %v1320_v50 = vpop.f32.mrb[12].mxu0 }
  0xfe   : > { %v1585_v51 = vpop.eup %1399  ;;  %v425_v52 = vpop.f32.mrb[13].mxu0  ;;  %v498_v53 = vpack.c.bf16 %v1583_v49, %v1394_v47  ;;  %v434_v57 = vadd.f32 %v1320_v50, %v1558_v16 }
  0xff   : > { %v426_v54 = vadd.f32 %v1558_v16, %v425_v52  ;;  %v1321_v55 = vpop.f32.mrb[14].mxu0  ;;  %v499_v56 = vpack.c.bf16 %v1396_v48, %v1585_v51 }
 0x100   : > { %v437_v58 = vadd.f32 %v1321_v55, %v1558_v16  ;;  %v428_v59 = vpop.f32.mrb[15].mxu0  ;;  %1338 = vmatprep.mubr.msk.bf16.mxu1 %vm306_vm0, %v498_v53 }
 0x101   : > { %1409 = vtanh.f32 %v426_v54  ;;  %v429_v60 = vadd.f32 %v1558_v16, %v428_v59  ;;  %1339 = vmatmul.mubr.msk.bf16.gmra.mrb[4].mxu1 %vm306_vm0, %v499_v56 }
 0x102   : > { %1411 = vtanh.f32 %v437_v58 }
 0x103   : > { %v1595_v61 = vpop.eup %1401  ;;  %1413 = vtanh.f32 %v429_v60 }
 0x104   : > { %v1597_v62 = vpop.eup %1403  ;;  %1415 = vtanh.f32 %v434_v57 }
 0x105   : > { %v1599_v63 = vpop.eup %1405  ;;  %v1324_v0 = vpop.f32.mrb[16].mxu0 }
 0x106   : > { %v1408_v1 = vpop.eup %1407  ;;  %v441_v2 = vpop.f32.mrb[17].mxu0  ;;  %v500_v3 = vpack.c.bf16 %v1599_v63, %v1595_v61  ;;  %v450_v7 = vadd.f32 %v1324_v0, %v1558_v16 }
 0x107   : > { %v442_v4 = vadd.f32 %v1558_v16, %v441_v2  ;;  %v1325_v5 = vpop.f32.mrb[18].mxu0  ;;  %v501_v6 = vpack.c.bf16 %v1597_v62, %v1408_v1 }
 0x108   : > { %v453_v8 = vadd.f32 %v1325_v5, %v1558_v16  ;;  %v444_v9 = vpop.f32.mrb[19].mxu0  ;;  %1342 = vmatprep.mubr.msk.bf16.mxu1 %vm306_vm0, %v500_v3  ;;  %v1271_v5 = vld [vmem:[%s1793_s3 + $0x2] ss:$0 sm:$0xff] }
 0x109   : > { %1417 = vtanh.f32 %v442_v4  ;;  %v445_v10 = vadd.f32 %v1558_v16, %v444_v9  ;;  %1343 = vmatmul.mubr.msk.bf16.gmra.mrb[8].mxu1 %vm306_vm0, %v501_v6  ;;  %v1270_v6 = vld [vmem:[%s1793_s3 + $0x1] ss:$0 sm:$0xff] }
 0x10a   : > { %1419 = vtanh.f32 %v453_v8 }
 0x10b   : > { %v1610_v11 = vpop.eup %1409  ;;  %1421 = vtanh.f32 %v445_v10 }
 0x10c   : > { %v1612_v12 = vpop.eup %1411  ;;  %1423 = vtanh.f32 %v450_v7 }
 0x10d   : > { %v1414_v13 = vpop.eup %1413  ;;  %v1328_v14 = vpop.f32.mrb[20].mxu0 }
 0x10e   : > { %v1614_v15 = vpop.eup %1415  ;;  %v457_v17 = vpop.f32.mrb[21].mxu0  ;;  %v502_v18 = vpack.c.bf16 %v1414_v13, %v1610_v11  ;;  %v466_v22 = vadd.f32 %v1328_v14, %v1558_v16 }
 0x10f   : > { %v458_v19 = vadd.f32 %v1558_v16, %v457_v17  ;;  %v1329_v20 = vpop.f32.mrb[22].mxu0  ;;  %v503_v21 = vpack.c.bf16 %v1612_v12, %v1614_v15 }
 0x110   : > { %v469_v23 = vadd.f32 %v1329_v20, %v1558_v16  ;;  %v460_v24 = vpop.f32.mrb[23].mxu0  ;;  %1346 = vmatprep.mubr.msk.bf16.mxu1 %vm306_vm0, %v502_v18 }
 0x111   : > { %1425 = vtanh.f32 %v458_v19  ;;  %v461_v25 = vadd.f32 %v1558_v16, %v460_v24  ;;  %1347 = vmatmul.mubr.msk.bf16.gmra.mrb[12].mxu1 %vm306_vm0, %v503_v21 }
 0x112   : > { %1427 = vtanh.f32 %v469_v23 }
 0x113   : > { %v1418_v26 = vpop.eup %1417  ;;  %1429 = vtanh.f32 %v461_v25 }
 0x114   : > { %v1420_v27 = vpop.eup %1419  ;;  %1431 = vtanh.f32 %v466_v22 }
 0x115   : > { %v1625_v28 = vpop.eup %1421 }
 0x116   : > { %v1627_v29 = vpop.eup %1423  ;;  %v504_v30 = vpack.c.bf16 %v1625_v28, %v1418_v26 }
 0x117   : > { %v505_v31 = vpack.c.bf16 %v1420_v27, %v1627_v29 }
 0x118   : > { %1350 = vmatprep.mubr.msk.bf16.mxu1 %vm306_vm0, %v504_v30 }
 0x119   : > { %1351 = vmatmul.mubr.msk.bf16.gmra.mrb[16].mxu1 %vm306_vm0, %v505_v31 }
 0x11b   : > { %v1633_v16 = vpop.eup %1425 }
 0x11c   : > { %v1635_v32 = vpop.eup %1427 }
 0x11d   : > { %v1637_v35 = vpop.eup %1429 }
 0x11e   : > { %v1432_v36 = vpop.eup %1431  ;;  %v506_v38 = vpack.c.bf16 %v1637_v35, %v1633_v16 }
 0x11f   : > { %v507_v39 = vpack.c.bf16 %v1635_v32, %v1432_v36 }
 0x120   : > { %1354 = vmatprep.mubr.msk.bf16.mxu1 %vm306_vm0, %v506_v38 }
 0x121   : > { %1355 = vmatmul.mubr.msk.bf16.gmra.mrb[20].mxu1 %vm306_vm0, %v507_v39 }
 0x1cc   : > { %v1336_v40 = vpop.f32.mrb[0].mxu1 }
 0x1cd   : > { %697 = vrot.lane.b32.xlu0 %v1336_v40, %s1489_s6  ;;  %v594_v41 = vpop.f32.mrb[1].mxu1 }
 0x1ce   : > { %v1337_v42 = vpop.f32.mrb[2].mxu1 }
 0x1cf   : > { %v1644_v43 = vpop.f32.mrb[3].mxu1 }
 0x1d4   : > { %v1340_v44 = vpop.f32.mrb[4].mxu1 }
 0x1d5   : > { %v1646_v45 = vpop.f32.mrb[5].mxu1 }
 0x1d6   : > { %v1648_v46 = vpop.f32.mrb[6].mxu1 }
 0x1d7   : > { %v613_v47 = vpop.f32.mrb[7].mxu1 }
 0x1d8   : > { %699 = vrot.lane.b32.xlu0 %v613_v47, %s1489_s6 }
 0x1dc   : > { %v1650_v48 = vpop.f32.mrb[8].mxu1 }
 0x1dd   : > { %v626_v50 = vpop.f32.mrb[9].mxu1 }
 0x1de   : > { %701 = vrot.lane.b32.xlu1 %v626_v50, %s1489_s6  ;;  %v1345_v52 = vpop.f32.mrb[10].mxu1 }
 0x1df   : > { %v629_v53 = vpop.f32.mrb[11].mxu1 }
 0x1e2   : > { %703 = vrot.lane.b32.xlu1 %v1345_v52, %s1489_s6 }
 0x1e4   : > { %v1348_v54 = vpop.f32.mrb[12].mxu1 }
 0x1e5   : > { %705 = vrot.lane.b32.xlu0 %v1348_v54, %s1489_s6  ;;  %v642_v55 = vpop.f32.mrb[13].mxu1 }
 0x1e6   : > { %v1349_v56 = vpop.f32.mrb[14].mxu1 }
 0x1e7   : > { %v1652_v57 = vpop.f32.mrb[15].mxu1 }
 0x1ec   : > { %v1352_v58 = vpop.f32.mrb[16].mxu1 }
 0x1ed   : > { %v1654_v59 = vpop.f32.mrb[17].mxu1 }
 0x1ee   : > { %v1656_v60 = vpop.f32.mrb[18].mxu1 }
 0x1ef   : > { %v661_v0 = vpop.f32.mrb[19].mxu1 }
 0x1f0   : > { %707 = vrot.lane.b32.xlu1 %v661_v0, %s1489_s6 }
 0x1f4   : > { %v1658_v1 = vpop.f32.mrb[20].mxu1 }
 0x1f5   : > { %v674_v2 = vpop.f32.mrb[21].mxu1 }
 0x1f6   : > { %709 = vrot.lane.b32.xlu0 %v674_v2, %s1489_s6  ;;  %v1357_v3 = vpop.f32.mrb[22].mxu1 }
 0x1f7   : > { %711 = vrot.lane.b32.xlu1 %v1357_v3, %s1489_s6  ;;  %v677_v4 = vpop.f32.mrb[23].mxu1 }
 0x1fa   : > { %754 = vrot.lane.b32.xlu0 %v1271_v5, %s1490_s9 }
 0x23f   : > { %v698_v7 = vpop.permute.xlu0 %697 }
 0x240   : > { %v721_v8 = vadd.f32 %v698_v7, %v594_v41 }
 0x242   : > { %v733_v9 = vadd.f32 %v1270_v6, %v721_v8 }
 0x244   : > { %1433 = vtanh.f32 %v733_v9 }
 0x24a   : > { %v700_v10 = vpop.permute.xlu0 %699 }
 0x24b   : > { %v722_v13 = vadd.f32 %v1337_v42, %v700_v10 }
 0x24d   : > { %v734_v14 = vadd.f32 %v1270_v6, %v722_v13 }
 0x24e   : > { %v1434_v17 = vpop.eup %1433 }
 0x24f   : > { %1435 = vtanh.f32 %v734_v14  ;;  %773 = vrot.lane.b32.xlu1 %v1434_v17, %s1490_s9 }
 0x250   : > { %v702_v18 = vpop.permute.xlu1 %701 }
 0x251   : > { %v723_v19 = vadd.f32 %v1340_v44, %v702_v18 }
 0x253   : > { %v735_v20 = vadd.f32 %v1270_v6, %v723_v19 }
 0x254   : > { %v704_v21 = vpop.permute.xlu1 %703 }
 0x255   : > { %1437 = vtanh.f32 %v735_v20  ;;  %v724_v22 = vadd.f32 %v704_v21, %v629_v53 }
 0x257   : > { %v736_v23 = vadd.f32 %v1270_v6, %v724_v22  ;;  %v706_v24 = vpop.permute.xlu0 %705 }
 0x258   : > { %v725_v25 = vadd.f32 %v706_v24, %v642_v55 }
 0x259   : > { %v1436_v26 = vpop.eup %1435  ;;  %1439 = vtanh.f32 %v736_v23 }
 0x25a   : > { %v737_v27 = vadd.f32 %v1270_v6, %v725_v25  ;;  %775 = vrot.lane.b32.xlu0 %v1436_v26, %s1490_s9 }
 0x25c   : > { %1441 = vtanh.f32 %v737_v27 }
 0x25f   : > { %v1438_v30 = vpop.eup %1437 }
 0x260   : > { %777 = vrot.lane.b32.xlu1 %v1438_v30, %s1490_s9 }
 0x262   : > { %v708_v31 = vpop.permute.xlu1 %707 }
 0x263   : > { %v1440_v36 = vpop.eup %1439  ;;  %v726_v38 = vadd.f32 %v1349_v56, %v708_v31 }
 0x264   : > { %779 = vrot.lane.b32.xlu0 %v1440_v36, %s1490_s9 }
 0x265   : > { %v738_v39 = vadd.f32 %v1270_v6, %v726_v38 }
 0x266   : > { %v1442_v40 = vpop.eup %1441 }
 0x267   : > { %1443 = vtanh.f32 %v738_v39  ;;  %781 = vrot.lane.b32.xlu1 %v1442_v40, %s1490_s9 }
 0x268   : > { %v710_v41 = vpop.permute.xlu0 %709 }
 0x269   : > { %v727_v42 = vadd.f32 %v1352_v58, %v710_v41  ;;  %v712_v44 = vpop.permute.xlu1 %711 }
 0x26a   : > { %v728_v47 = vadd.f32 %v712_v44, %v677_v4 }
 0x26b   : > { %v739_v50 = vadd.f32 %v1270_v6, %v727_v42 }
 0x26c   : > { %v740_v52 = vadd.f32 %v1270_v6, %v728_v47  ;;  %v755_v56 = vpop.permute.xlu0 %754 }
 0x26d   : > { %1445 = vtanh.f32 %v739_v50  ;;  %v757_v0 = vadd.f32 %v755_v56, %v1644_v43  ;;  %v758_v3 = vadd.f32 %v755_v56, %v1646_v45  ;;  %v759_v6 = vadd.f32 %v1648_v46, %v755_v56 }
 0x26e   : > { %1447 = vtanh.f32 %v740_v52  ;;  %v760_v9 = vadd.f32 %v1650_v48, %v755_v56  ;;  %v761_v43 = vadd.f32 %v755_v56, %v1652_v57  ;;  %v762_v45 = vadd.f32 %v755_v56, %v1654_v59 }
 0x26f   : > { %v763_v46 = vadd.f32 %v1656_v60, %v755_v56  ;;  %v764_v21 = vadd.f32 %v1658_v1, %v755_v56 }
 0x271   : > { %v1444_v53 = vpop.eup %1443 }
 0x272   : > { %783 = vrot.lane.b32.xlu0 %v1444_v53, %s1490_s9 }
 0x277   : > { %v1446_v54 = vpop.eup %1445 }
 0x278   : > { %v1448_v55 = vpop.eup %1447  ;;  %785 = vrot.lane.b32.xlu1 %v1446_v54, %s1490_s9 }
 0x279   : > { %787 = vrot.lane.b32.xlu0 %v1448_v55, %s1490_s9 }
 0x2c1   : > { %v774_v2 = vpop.permute.xlu1 %773 }
 0x2c2   : > { %v797_v58 = vmul.f32 %v774_v2, %v757_v0 }
 0x2c4   : > { %813 = vrot.lane.b32.xlu1 %v797_v58, %s1491_s12 }
 0x2cc   : > { %v776_v4 = vpop.permute.xlu0 %775 }
 0x2cd   : > { %v798_v5 = vmul.f32 %v776_v4, %v758_v3 }
 0x2cf   : > { %815 = vrot.lane.b32.xlu0 %v798_v5, %s1491_s12 }
 0x2d2   : > { %v778_v7 = vpop.permute.xlu1 %777 }
 0x2d3   : > { %v799_v8 = vmul.f32 %v778_v7, %v759_v6 }
 0x2d5   : > { %817 = vrot.lane.b32.xlu1 %v799_v8, %s1491_s12 }
 0x2d6   : > { %v780_v10 = vpop.permute.xlu0 %779 }
 0x2d7   : > { %v800_v13 = vmul.f32 %v780_v10, %v760_v9 }
 0x2d9   : > { %v782_v14 = vpop.permute.xlu1 %781  ;;  %819 = vrot.lane.b32.xlu0 %v800_v13, %s1491_s12 }
 0x2da   : > { %v801_v17 = vmul.f32 %v782_v14, %v761_v43 }
 0x2dc   : > { %821 = vrot.lane.b32.xlu1 %v801_v17, %s1491_s12 }
 0x2e4   : > { %v784_v18 = vpop.permute.xlu0 %783 }
 0x2e5   : > { %v802_v19 = vmul.f32 %v784_v18, %v762_v45 }
 0x2e7   : > { %823 = vrot.lane.b32.xlu0 %v802_v19, %s1491_s12 }
 0x2ea   : > { %v786_v20 = vpop.permute.xlu1 %785 }
 0x2eb   : > { %v803_v22 = vmul.f32 %v786_v20, %v763_v46  ;;  %v788_v48 = vpop.permute.xlu0 %787 }
 0x2ec   : > { %v804_v23 = vmul.f32 %v788_v48, %v764_v21 }
 0x2ed   : > { %825 = vrot.lane.b32.xlu1 %v803_v22, %s1491_s12 }
 0x2ee   : > { %827 = vrot.lane.b32.xlu0 %v804_v23, %s1491_s12 }
 0x336   : > { %v814_v57 = vpop.permute.xlu1 %813 }
 0x337   : > { %v837_v24 = vsel %vm306_vm0, %v814_v57, 0.0 }
 0x338   : > { %838 = vadd.xlane.f32.xlu1 %v837_v24 }
 0x341   : > { %v816_v25 = vpop.permute.xlu0 %815 }
 0x342   : > { %v840_v59 = vsel %vm306_vm0, %v816_v25, 0.0 }
 0x343   : > { %841 = vadd.xlane.f32.xlu0 %v840_v59 }
 0x347   : > { %v818_v26 = vpop.permute.xlu1 %817 }
 0x348   : > { %v843_v27 = vsel %vm306_vm0, %v818_v26, 0.0 }
 0x349   : > { %844 = vadd.xlane.f32.xlu0 %v843_v27 }
 0x34b   : > { %v820_v60 = vpop.permute.xlu0 %819 }
 0x34c   : > { %v846_v1 = vsel %vm306_vm0, %v820_v60, 0.0 }
 0x34d   : > { %847 = vadd.xlane.f32.xlu1 %v846_v1 }
 0x34e   : > { %v822_v30 = vpop.permute.xlu1 %821 }
 0x34f   : > { %v849_v31 = vsel %vm306_vm0, %v822_v30, 0.0 }
 0x350   : > { %850 = vadd.xlane.f32.xlu0 %v849_v31 }
 0x359   : > { %v824_v36 = vpop.permute.xlu0 %823 }
 0x35a   : > { %v852_v38 = vsel %vm306_vm0, %v824_v36, 0.0 }
 0x35b   : > { %853 = vadd.xlane.f32.xlu1 %v852_v38 }
 0x35f   : > { %v826_v39 = vpop.permute.xlu1 %825 }
 0x360   : > { %v828_v40 = vpop.permute.xlu0 %827  ;;  %v855_v41 = vsel %vm306_vm0, %v826_v39, 0.0 }
 0x361   : > { %856 = vadd.xlane.f32.xlu0 %v855_v41  ;;  %v858_v42 = vsel %vm306_vm0, %v828_v40, 0.0 }
 0x362   : > { %859 = vadd.xlane.f32.xlu1 %v858_v42 }
 0x3c5   : > { %v839_v44 = vpop.xlane.xlu1 %838 }
 0x3c6   : > { %v861_v47 = vrot.slane %v839_v44, 4 }
 0x3c8   : > { %v862_v50 = vmax.f32 %v839_v44, %v861_v47 }
 0x3ca   : > { %v863_v52 = vrot.slane %v862_v50, 2 }
 0x3cc   : > { %v864_v53 = vmax.f32 %v862_v50, %v863_v52 }
 0x3ce   : > { %v865_v54 = vrot.slane %v864_v53, 1 }
 0x3d0   : > { %v866_v55 = vmax.f32 %v864_v53, %v865_v54  ;;  %v842_v56 = vpop.xlane.xlu0 %841 }
 0x3d1   : > { %v867_v0 = vrot.slane %v842_v56, 4 }
 0x3d2   : > { %v909_v2 = vsub.f32 %v839_v44, %v866_v55 }
 0x3d3   : > { %v868_v58 = vmax.f32 %v842_v56, %v867_v0 }
 0x3d4   : > { %v917_v3 = vmul.f32 1.442695, %v909_v2 }
 0x3d5   : > { %v869_v4 = vrot.slane %v868_v58, 2 }
 0x3d6   : > { %1449 = vpow2.f32 %v917_v3  ;;  %v845_v5 = vpop.xlane.xlu0 %844 }
 0x3d7   : > { %v870_v6 = vmax.f32 %v868_v58, %v869_v4  ;;  %v873_v7 = vrot.slane %v845_v5, 4 }
 0x3d9   : > { %v871_v8 = vrot.slane %v870_v6, 1  ;;  %v874_v9 = vmax.f32 %v845_v5, %v873_v7 }
 0x3da   : > { %v848_v10 = vpop.xlane.xlu1 %847 }
 0x3db   : > { %v872_v13 = vmax.f32 %v870_v6, %v871_v8  ;;  %v875_v43 = vrot.slane %v874_v9, 2  ;;  %v879_v14 = vrot.slane %v848_v10, 4 }
 0x3dd   : > { %v910_v17 = vsub.f32 %v842_v56, %v872_v13  ;;  %v876_v45 = vmax.f32 %v874_v9, %v875_v43  ;;  %v880_v18 = vmax.f32 %v848_v10, %v879_v14  ;;  %v851_v19 = vpop.xlane.xlu0 %850 }
 0x3de   : > { %v885_v46 = vrot.slane %v851_v19, 4 }
 0x3df   : > { %v919_v20 = vmul.f32 1.442695, %v910_v17  ;;  %v877_v21 = vrot.slane %v876_v45, 1  ;;  %v881_v22 = vrot.slane %v880_v18, 2 }
 0x3e0   : > { %v1691_v48 = vpop.eup %1449  ;;  %v886_v23 = vmax.f32 %v851_v19, %v885_v46 }
 0x3e1   : > { %v933_v57 = vrot.slane %v1691_v48, 4  ;;  %1451 = vpow2.f32 %v919_v20  ;;  %v878_v24 = vmax.f32 %v876_v45, %v877_v21  ;;  %v882_v25 = vmax.f32 %v880_v18, %v881_v22 }
 0x3e2   : > { %v887_v59 = vrot.slane %v886_v23, 2 }
 0x3e3   : > { %v934_v26 = vadd.f32 %v1691_v48, %v933_v57  ;;  %v911_v27 = vsub.f32 %v845_v5, %v878_v24  ;;  %v883_v60 = vrot.slane %v882_v25, 1 }
 0x3e4   : > { %v888_v1 = vmax.f32 %v886_v23, %v887_v59 }
 0x3e5   : > { %v935_v30 = vrot.slane %v934_v26, 2  ;;  %v921_v31 = vmul.f32 1.442695, %v911_v27  ;;  %v884_v36 = vmax.f32 %v882_v25, %v883_v60 }
 0x3e6   : > { %v889_v38 = vrot.slane %v888_v1, 1 }
 0x3e7   : > { %v936_v39 = vadd.f32 %v935_v30, %v934_v26  ;;  %1453 = vpow2.f32 %v921_v31  ;;  %v912_v40 = vsub.f32 %v848_v10, %v884_v36 }
 0x3e8   : > { %v890_v41 = vmax.f32 %v888_v1, %v889_v38  ;;  %v854_v42 = vpop.xlane.xlu1 %853 }
 0x3e9   : > { %v937_v44 = vrot.slane %v936_v39, 1  ;;  %v923_v47 = vmul.f32 1.442695, %v912_v40  ;;  %v891_v50 = vrot.slane %v854_v42, 4 }
 0x3ea   : > { %v913_v52 = vsub.f32 %v851_v19, %v890_v41 }
 0x3eb   : > { %v1695_v53 = vpop.eup %1451  ;;  %v938_v54 = vadd.f32 %v937_v44, %v936_v39  ;;  %1455 = vpow2.f32 %v923_v47  ;;  %v892_v55 = vmax.f32 %v854_v42, %v891_v50 }
 0x3ec   : > { %v939_v56 = vrot.slane %v1695_v53, 4  ;;  %v925_v0 = vmul.f32 1.442695, %v913_v52 }
 0x3ed   : > { %v893_v2 = vrot.slane %v892_v55, 2 }
 0x3ee   : > { %v940_v58 = vadd.f32 %v1695_v53, %v939_v56  ;;  %1457 = vpow2.f32 %v925_v0  ;;  %v857_v3 = vpop.xlane.xlu0 %856 }
 0x3ef   : > { %1459 = vrcp.f32 %v938_v54  ;;  %v894_v4 = vmax.f32 %v892_v55, %v893_v2  ;;  %v897_v5 = vrot.slane %v857_v3, 4  ;;  %v860_v6 = vpop.xlane.xlu1 %859 }
 0x3f0   : > { %v941_v7 = vrot.slane %v940_v58, 2  ;;  %v903_v8 = vrot.slane %v860_v6, 4 }
 0x3f1   : > { %v1699_v9 = vpop.eup %1453  ;;  %v895_v10 = vrot.slane %v894_v4, 1  ;;  %v898_v13 = vmax.f32 %v857_v3, %v897_v5 }
 0x3f2   : > { %v942_v43 = vadd.f32 %v941_v7, %v940_v58  ;;  %v945_v14 = vrot.slane %v1699_v9, 4  ;;  %v904_v17 = vmax.f32 %v860_v6, %v903_v8 }
 0x3f3   : > { %v896_v45 = vmax.f32 %v894_v4, %v895_v10  ;;  %v899_v18 = vrot.slane %v898_v13, 2 }
 0x3f4   : > { %v943_v19 = vrot.slane %v942_v43, 1  ;;  %v946_v46 = vadd.f32 %v1699_v9, %v945_v14  ;;  %v905_v20 = vrot.slane %v904_v17, 2 }
 0x3f5   : > { %v1703_v21 = vpop.eup %1455  ;;  %v914_v22 = vsub.f32 %v854_v42, %v896_v45  ;;  %v900_v23 = vmax.f32 %v898_v13, %v899_v18 }
 0x3f6   : > { %v944_v57 = vadd.f32 %v943_v19, %v942_v43  ;;  %v947_v24 = vrot.slane %v946_v46, 2  ;;  %v951_v25 = vrot.slane %v1703_v21, 4  ;;  %v906_v59 = vmax.f32 %v904_v17, %v905_v20 }
 0x3f7   : > { %v927_v26 = vmul.f32 1.442695, %v914_v22  ;;  %v901_v27 = vrot.slane %v900_v23, 1 }
 0x3f8   : > { %v1706_v60 = vpop.eup %1457  ;;  %1461 = vrcp.f32 %v944_v57  ;;  %v948_v1 = vadd.f32 %v947_v24, %v946_v46  ;;  %v952_v30 = vadd.f32 %v1703_v21, %v951_v25  ;;  %v907_v31 = vrot.slane %v906_v59, 1 }
 0x3f9   : > { %v1460_v36 = vpop.eup %1459  ;;  %v957_v38 = vrot.slane %v1706_v60, 4  ;;  %1463 = vpow2.f32 %v927_v26  ;;  %v902_v39 = vmax.f32 %v900_v23, %v901_v27 }
 0x3fa   : > { %v949_v40 = vrot.slane %v948_v1, 1  ;;  %v953_v41 = vrot.slane %v952_v30, 2  ;;  %v908_v42 = vmax.f32 %v906_v59, %v907_v31  ;;  %v989_v55 = vmul.f32 %v1460_v36, %v1691_v48 }
 0x3fb   : > { %v958_v44 = vadd.f32 %v1706_v60, %v957_v38  ;;  %v915_v47 = vsub.f32 %v857_v3, %v902_v39 }
 0x3fc   : > { %v950_v50 = vadd.f32 %v949_v40, %v948_v1  ;;  %v954_v52 = vadd.f32 %v953_v41, %v952_v30  ;;  %v916_v54 = vsub.f32 %v860_v6, %v908_v42  ;;  %v997_v7 = vmul.f32 %v1568_v33, %v989_v55 }
 0x3fd   : > { %v959_v56 = vrot.slane %v958_v44, 2  ;;  %v929_v0 = vmul.f32 1.442695, %v915_v47  ;;  %v1085_v48 = vmul.f32 %v1572_v37, %v989_v55 }
 0x3fe   : > { %1465 = vrcp.f32 %v950_v50  ;;  %v955_v2 = vrot.slane %v954_v52, 1  ;;  %v931_v58 = vmul.f32 1.442695, %v916_v54  ;;  %v1005_v14 = vsel %vm306_vm0, %v997_v7, 0.0 }
 0x3ff   : > { %v960_v4 = vadd.f32 %v959_v56, %v958_v44  ;;  %1467 = vpow2.f32 %v929_v0  ;;  %v1006_v18 = vrot.slane %v1005_v14, 4  ;;  %v1093_v46 = vsel %vm306_vm0, %v1085_v48, 0.0 }
 0x400   : > { %v956_v5 = vadd.f32 %v955_v2, %v954_v52  ;;  %1469 = vpow2.f32 %v931_v58  ;;  %v1094_v59 = vrot.slane %v1093_v46, 4 }
 0x401   : > { %v961_v8 = vrot.slane %v960_v4, 1  ;;  %v1007_v1 = vadd.f32 %v1006_v18, %v1005_v14 }
 0x402   : > { %v1462_v10 = vpop.eup %1461  ;;  %1471 = vrcp.f32 %v956_v5  ;;  %v1095_v50 = vadd.f32 %v1094_v59, %v1093_v46 }
 0x403   : > { %v1713_v3 = vpop.eup %1463  ;;  %v962_v13 = vadd.f32 %v961_v8, %v960_v4  ;;  %v990_v6 = vmul.f32 %v1462_v10, %v1695_v53  ;;  %v1008_v55 = vrot.slane %v1007_v1, 2 }
 0x404   : > { %v963_v43 = vrot.slane %v1713_v3, 4 }
 0x405   : > { %1473 = vrcp.f32 %v962_v13  ;;  %v998_v17 = vmul.f32 %v1570_v34, %v990_v6  ;;  %v1086_v45 = vmul.f32 %v1583_v49, %v990_v6  ;;  %v1009_v6 = vadd.f32 %v1008_v55, %v1007_v1 }
 0x406   : > { %v964_v33 = vadd.f32 %v1713_v3, %v963_v43  ;;  %v1096_v43 = vrot.slane %v1095_v50, 2 }
 0x407   : > { %v1012_v19 = vsel %vm306_vm0, %v998_v17, 0.0  ;;  %v1100_v53 = vsel %vm306_vm0, %v1086_v45, 0.0  ;;  %v1010_v59 = vrot.slane %v1009_v6, 1 }
 0x408   : > { %v1466_v20 = vpop.eup %1465  ;;  %v965_v37 = vrot.slane %v964_v33, 2  ;;  %v1013_v22 = vrot.slane %v1012_v19, 4  ;;  %v1101_v23 = vrot.slane %v1100_v53, 4 }
 0x409   : > { %v1725_v57 = vpop.eup %1467  ;;  %v991_v24 = vmul.f32 %v1466_v20, %v1699_v9  ;;  %v1097_v20 = vadd.f32 %v1096_v43, %v1095_v50 }
 0x40a   : > { %v1728_v34 = vpop.eup %1469  ;;  %v966_v49 = vadd.f32 %v965_v37, %v964_v33  ;;  %v969_v25 = vrot.slane %v1725_v57, 4  ;;  %v1014_v30 = vadd.f32 %v1013_v22, %v1012_v19  ;;  %v1102_v39 = vadd.f32 %v1101_v23, %v1100_v53 }
 0x40b   : > { %v975_v26 = vrot.slane %v1728_v34, 4  ;;  %v999_v27 = vmul.f32 %v1585_v51, %v991_v24  ;;  %v1087_v41 = vmul.f32 %v1595_v61, %v991_v24 }
 0x40c   : > { %v1472_v31 = vpop.eup %1471  ;;  %v970_v36 = vadd.f32 %v1725_v57, %v969_v25  ;;  %v967_v38 = vrot.slane %v966_v49, 1  ;;  %v1015_v56 = vrot.slane %v1014_v30, 2  ;;  %v1103_v58 = vrot.slane %v1102_v39, 2 }
 0x40d   : > { %v976_v40 = vadd.f32 %v1728_v34, %v975_v26  ;;  %v992_v9 = vmul.f32 %v1472_v31, %v1703_v21  ;;  %v1019_v47 = vsel %vm306_vm0, %v999_v27, 0.0  ;;  %v1107_v5 = vsel %vm306_vm0, %v1087_v41, 0.0 }
 0x40e   : > { %v971_v42 = vrot.slane %v970_v36, 2  ;;  %v968_v44 = vadd.f32 %v967_v38, %v966_v49  ;;  %v1020_v21 = vrot.slane %v1019_v47, 4  ;;  %v1104_v45 = vadd.f32 %v1103_v58, %v1102_v39 }
 0x40f   : > { %v1474_v52 = vpop.eup %1473  ;;  %v977_v51 = vrot.slane %v976_v40, 2  ;;  %v1000_v54 = vmul.f32 %v1599_v63, %v992_v9  ;;  %v1088_v13 = vmul.f32 %v1597_v62, %v992_v9  ;;  %v1108_v46 = vrot.slane %v1107_v5, 4 }
 0x410   : > { %v972_v0 = vadd.f32 %v971_v42, %v970_v36  ;;  %1475 = vrcp.f32 %v968_v44  ;;  %v993_v2 = vmul.f32 %v1474_v52, %v1706_v60  ;;  %v1016_v60 = vadd.f32 %v1015_v56, %v1014_v30 }
 0x411   : > { %v978_v4 = vadd.f32 %v977_v51, %v976_v40  ;;  %v1026_v61 = vsel %vm306_vm0, %v1000_v54, 0.0  ;;  %v1021_v18 = vadd.f32 %v1020_v21, %v1019_v47  ;;  %v1109_v37 = vadd.f32 %v1108_v46, %v1107_v5 }
 0x412   : > { %v973_v7 = vrot.slane %v972_v0, 1  ;;  %v1001_v8 = vmul.f32 %v1610_v11, %v993_v2  ;;  %v1027_v10 = vrot.slane %v1026_v61, 4  ;;  %v1089_v48 = vmul.f32 %v1614_v15, %v993_v2 }
 0x413   : > { %v979_v63 = vrot.slane %v978_v4, 1  ;;  %v1114_v11 = vsel %vm306_vm0, %v1088_v13, 0.0  ;;  %v1017_v15 = vrot.slane %v1016_v60, 1  ;;  %v1105_v22 = vrot.slane %v1104_v45, 1 }
 0x414   : > { %v974_v14 = vadd.f32 %v973_v7, %v972_v0  ;;  %v1033_v17 = vsel %vm306_vm0, %v1001_v8, 0.0  ;;  %v1028_v19 = vadd.f32 %v1027_v10, %v1026_v61  ;;  %v1121_v62 = vsel %vm306_vm0, %v1089_v48, 0.0 }
 0x415   : > { %v980_v33 = vadd.f32 %v979_v63, %v978_v4  ;;  %v1034_v53 = vrot.slane %v1033_v17, 4  ;;  %v1115_v23 = vrot.slane %v1114_v11, 4  ;;  %v1122_v24 = vrot.slane %v1121_v62, 4 }
 0x416   : > { %1477 = vrcp.f32 %v974_v14  ;;  %v1022_v49 = vrot.slane %v1021_v18, 2  ;;  %v1029_v26 = vrot.slane %v1028_v19, 2  ;;  %v1098_v31 = vrot.slane %v1097_v20, 1 }
 0x417   : > { %1479 = vrcp.f32 %v980_v33  ;;  %v1035_v27 = vadd.f32 %v1034_v53, %v1033_v17  ;;  %v1116_v1 = vadd.f32 %v1115_v23, %v1114_v11  ;;  %v1110_v36 = vrot.slane %v1109_v37, 2 }
 0x418   : > { %v1018_v38 = vadd.f32 %v1017_v15, %v1016_v60  ;;  %v1106_v39 = vadd.f32 %v1105_v22, %v1104_v45  ;;  %v1123_v40 = vadd.f32 %v1122_v24, %v1121_v62  ;;  %v1023_v41 = vadd.f32 %v1022_v49, %v1021_v18 }
 0x419   : > { %v1117_v44 = vrot.slane %v1116_v1, 2  ;;  %v1011_v47 = vadd.f32 %v1010_v59, %v1009_v6  ;;  %v1030_v50 = vadd.f32 %v1029_v26, %v1028_v19  ;;  %v1036_v52 = vrot.slane %v1035_v27, 2 }
 0x41a   : > { %v1476_v25 = vpop.eup %1475  ;;  %v1099_v54 = vadd.f32 %v1098_v31, %v1097_v20  ;;  %v1111_v55 = vadd.f32 %v1110_v36, %v1109_v37  ;;  %v1124_v58 = vrot.slane %v1123_v40, 2 }
 0x41b   : > { %v994_v30 = vmul.f32 %v1476_v25, %v1713_v3  ;;  %v1070_v2 = vsel %vm1069_vm1, %v1018_v38, %v1011_v47  ;;  %v1118_v61 = vadd.f32 %v1117_v44, %v1116_v1  ;;  %v1031_v8 = vrot.slane %v1030_v50, 1 }
 0x41c   : > { %v1157_v5 = vsel %vm1069_vm1, %v1106_v39, %v1099_v54  ;;  %v1037_v10 = vadd.f32 %v1036_v52, %v1035_v27  ;;  %v1112_v6 = vrot.slane %v1111_v55, 1  ;;  %v1125_v17 = vadd.f32 %v1124_v58, %v1123_v40 }
 0x41d   : > { %v1002_v9 = vmul.f32 %v1612_v12, %v994_v30  ;;  %v1090_v42 = vmul.f32 %v1625_v28, %v994_v30  ;;  %v1024_v28 = vrot.slane %v1023_v41, 1  ;;  %v1119_v45 = vrot.slane %v1118_v61, 1 }
 0x41e   : > { %v1038_v20 = vrot.slane %v1037_v10, 1  ;;  %v1126_v37 = vrot.slane %v1125_v17, 1  ;;  %v1032_v25 = vadd.f32 %v1031_v8, %v1030_v50  ;;  %v1113_v26 = vadd.f32 %v1112_v6, %v1111_v55 }
 0x41f   : > { %v1040_v51 = vsel %vm306_vm0, %v1002_v9, 0.0  ;;  %v1128_v3 = vsel %vm306_vm0, %v1090_v42, 0.0  ;;  %v1025_v62 = vadd.f32 %v1024_v28, %v1023_v41  ;;  %v1120_v30 = vadd.f32 %v1119_v45, %v1118_v61 }
 0x420   : > { %v1478_v56 = vpop.eup %1477  ;;  %v1041_v0 = vrot.slane %v1040_v51, 4  ;;  %v1129_v4 = vrot.slane %v1128_v3, 4  ;;  %v1039_v38 = vadd.f32 %v1038_v20, %v1037_v10  ;;  %v1127_v40 = vadd.f32 %v1126_v37, %v1125_v17 }
 0x421   : > { %v1480_v12 = vpop.eup %1479  ;;  %v995_v21 = vmul.f32 %v1478_v56, %v1725_v57  ;;  %v1072_v39 = vsel %vm1071_vm2, %v1025_v62, %v1070_v2  ;;  %v1158_v54 = vsel %vm1071_vm2, %v1113_v26, %v1157_v5 }
 0x422   : > { %v996_v7 = vmul.f32 %v1480_v12, %v1728_v34  ;;  %v1042_v13 = vadd.f32 %v1041_v0, %v1040_v51  ;;  %v1130_v48 = vadd.f32 %v1129_v4, %v1128_v3  ;;  %v1074_v52 = vsel %vm1073_vm3, %v1032_v25, %v1072_v39 }
 0x423   : > { %v1091_v63 = vmul.f32 %v1633_v16, %v995_v21  ;;  %v1003_v43 = vmul.f32 %v1627_v29, %v995_v21  ;;  %v1159_v56 = vsel %vm1073_vm3, %v1120_v30, %v1158_v54  ;;  %v1076_v2 = vsel %vm1075_vm4, %v1039_v38, %v1074_v52 }
 0x424   : > { %v1004_v14 = vmul.f32 %v1637_v35, %v996_v7  ;;  %v1043_v57 = vrot.slane %v1042_v13, 2  ;;  %v1092_v60 = vmul.f32 %v1635_v32, %v996_v7  ;;  %v1131_v34 = vrot.slane %v1130_v48, 2 }
 0x425   : > { %v1135_v33 = vsel %vm306_vm0, %v1091_v63, 0.0  ;;  %v1047_v18 = vsel %vm306_vm0, %v1003_v43, 0.0  ;;  %v1160_v4 = vsel %vm1075_vm4, %v1127_v40, %v1159_v56 }
 0x426   : > { %v1044_v19 = vadd.f32 %v1043_v57, %v1042_v13  ;;  %v1054_v16 = vsel %vm306_vm0, %v1004_v14, 0.0  ;;  %v1136_v46 = vrot.slane %v1135_v33, 4  ;;  %v1142_v29 = vsel %vm306_vm0, %v1092_v60, 0.0 }
 0x427   : > { %v1055_v35 = vrot.slane %v1054_v16, 4  ;;  %v1132_v53 = vadd.f32 %v1131_v34, %v1130_v48  ;;  %v1143_v32 = vrot.slane %v1142_v29, 4  ;;  %v1048_v11 = vrot.slane %v1047_v18, 4 }
 0x428   : > { %v1137_v15 = vadd.f32 %v1136_v46, %v1135_v33  ;;  %v1045_v59 = vrot.slane %v1044_v19, 1 }
 0x429   : > { %v1056_v22 = vadd.f32 %v1055_v35, %v1054_v16  ;;  %v1133_v23 = vrot.slane %v1132_v53, 1  ;;  %v1144_v24 = vadd.f32 %v1143_v32, %v1142_v29  ;;  %v1049_v49 = vadd.f32 %v1048_v11, %v1047_v18 }
 0x42a   : > { %v1138_v27 = vrot.slane %v1137_v15, 2  ;;  %v1046_v50 = vadd.f32 %v1045_v59, %v1044_v19 }
 0x42b   : > { %v1057_v1 = vrot.slane %v1056_v22, 2  ;;  %v1145_v31 = vrot.slane %v1144_v24, 2  ;;  %v1050_v36 = vrot.slane %v1049_v49, 2  ;;  %v1134_v42 = vadd.f32 %v1133_v23, %v1132_v53 }
 0x42c   : > { %v1139_v9 = vadd.f32 %v1138_v27, %v1137_v15  ;;  %v1078_v7 = vsel %vm1077_vm5, %v1046_v50, %v1076_v2 }
 0x42d   : > { %v1058_v41 = vadd.f32 %v1057_v1, %v1056_v22  ;;  %v1146_v44 = vadd.f32 %v1145_v31, %v1144_v24  ;;  %v1051_v47 = vadd.f32 %v1050_v36, %v1049_v49  ;;  %v1161_v28 = vsel %vm1077_vm5, %v1134_v42, %v1160_v4 }
 0x42e   : > { %v1140_v51 = vrot.slane %v1139_v9, 1 }
 0x42f   : > { %v1059_v55 = vrot.slane %v1058_v41, 1  ;;  %v1147_v3 = vrot.slane %v1146_v44, 1  ;;  %v1052_v0 = vrot.slane %v1051_v47, 1 }
 0x430   : > { %v1141_v58 = vadd.f32 %v1140_v51, %v1139_v9 }
 0x431   : > { %v1060_v12 = vadd.f32 %v1059_v55, %v1058_v41  ;;  %v1148_v21 = vadd.f32 %v1147_v3, %v1146_v44  ;;  %v1053_v61 = vadd.f32 %v1052_v0, %v1051_v47 }
 0x432   : > { %v1162_v5 = vsel %vm1079_vm6, %v1141_v58, %v1161_v28 }
 0x433   : > { %v1163_v8 = vsel %vm1081_vm7, %v1148_v21, %v1162_v5  ;;  %v1080_v10 = vsel %vm1079_vm6, %v1053_v61, %v1078_v7 }
 0x434   : > { %1164 = vrot.lane.b32.xlu0 %v1163_v8, %s1490_s9  ;;  %v1082_v13 = vsel %vm1081_vm7, %v1060_v12, %v1080_v10 }
 0x435   : > { %1084 = vst.msk [vmem:[%s197_s18] sm:$0xff] %vm306_vm0, %v1082_v13 }
 0x4a6   : > { %v1165_v63 = vpop.permute.xlu0 %1164 }
 0x4a7   : > { %1168 = vst.msk [vmem:[%s197_s18] sm:$0xff] %vm1167_vm8, %v1165_v63 }
 0x4a8 PF: > { %s14_s15 = sadd.s32 1, %s1487_s15  }
 0x4a9   : > { %p11_p5 = scmp.ge.s32.totalorder %s14_s15, 4  }
 0x4ab   :  { %13 = sbr.rel (!%p11_p5) target bundleno = 1 (0x1), region = 66 }

</bundles_post_ra>
